<compile_context>
chip_gen: v7x
topology: tpu7x:2x2x1
jax: 0.10.0
libtpu: 0.0.40
codegen_flags: <defaults>
</compile_context>

<pallas_src>
import functools

import jax
import jax.numpy as jnp
from jax.experimental import pallas as pl
from jax.experimental.pallas import tpu as pltpu


def _int_pow(x, n):
    """x ** n for small positive integer n via square-and-multiply (VPU muls only)."""
    assert n >= 1
    result = None
    cur = x
    while n > 0:
        if n & 1:
            result = cur if result is None else result * cur
        n >>= 1
        if n:
            cur = cur * cur
    return result


def _focal_loss_kernel(logit_ref, target_ref, out_ref, *, gamma, int_gamma,
                       binary_targets, row_tile, col_tile):
    x = logit_ref[...].astype(jnp.float32)
    t = target_ref[...].astype(jnp.float32)

    # Stable BCE-with-logits:
    #   logit - logit*target + max(-logit, 0) + log(exp(-max) + exp(-logit - max))
    # == logit - logit*target + max(-logit, 0) + log1p(exp(-|logit|))
    e_x = jnp.exp(-jnp.abs(x))                               # EUP
    lp_x = jnp.log1p(e_x)                                    # EUP (reused below)
    bce = x - x * t + jnp.maximum(-x, 0.0) + lp_x

    # Modulation term: exp(gamma * logsigmoid(z)),  z = -logit * (2*target - 1)
    z = -x * (t * 2.0 - 1.0)
    if binary_targets:
        # For t in {0, 1}: |z| == |x|, so reuse exp(-|x|) and log1p(exp(-|x|)).
        e_z, lp_z = e_x, lp_x
    else:
        e_z = jnp.exp(-jnp.abs(z))                           # EUP
        lp_z = None

    if int_gamma is not None:
        # exp(gamma * logsigmoid(z)) == sigmoid(z) ** gamma  (integer gamma -> VPU pow)
        sig = jnp.where(z >= 0.0, 1.0, e_z) / (1.0 + e_z)    # stable sigmoid(z)
        mod = jnp.ones_like(bce) if int_gamma == 0 else _int_pow(sig, int_gamma)
    else:
        # General (possibly non-integer) gamma.
        if lp_z is None:
            lp_z = jnp.log1p(e_z)                            # EUP
        invprobs = jnp.minimum(z, 0.0) - lp_z                # logsigmoid(z)
        mod = jnp.exp(invprobs * gamma)                      # EUP

    loss = mod * bce

    # Vreg-shaped partial sum: sublane-aligned row-group add then lane-chunk add.
    # Pure elementwise VPU adds; no full-to-scalar XLU reduction per grid step.
    part = loss.reshape(row_tile // 8, 8, col_tile).sum(axis=0)    # (8, col_tile)
    part = part.reshape(8, col_tile // 128, 128).sum(axis=1)       # (8, 128)

    # One resident (1,8,128) output block per row-tile; row axis is parallel,
    # class-tile axis (grid axis 1) is the reduction axis.
    @pl.when(pl.program_id(1) == 0)
    def _():
        out_ref[...] = jnp.zeros_like(out_ref)

    out_ref[0] += part


def _pick_tile(n, unit, cap):
    """Largest multiple of `unit` that divides `n` and is <= cap (assumes n % unit == 0)."""
    cap = max(unit, min(int(cap), n))
    t = (cap // unit) * unit
    while n % t != 0:
        t -= unit
    return t


def focal_loss(logit, target, gamma=2.0, *, binary_targets=False,
               max_row_tile=1024, vmem_budget_bytes=8 * 1024 * 1024):
    """Pallas implementation of FocalLoss.forward for 2-D (batch, classes) inputs.

    The kernel is HBM-bandwidth-bound for f32 inputs: passing bf16 logits and
    int8/bool/bf16 targets (do NOT pre-cast targets to f32 at the call site) is
    the cheapest way to speed it up; casting to f32 happens inside the kernel.

    WARNING: set binary_targets=True only if targets are strictly 0/1; soft
    targets with binary_targets=True silently produce wrong results (|z| != |x|).
    """
    assert logit.ndim == 2 and logit.shape == target.shape
    B, C = logit.shape
    assert B % 8 == 0 and C % 128 == 0, "shapes must tile to (8,128) vregs"

    lit = jnp.dtype(logit.dtype).itemsize
    tit = jnp.dtype(target.dtype).itemsize

    # Generation-aware scoped VMEM limit (v7x-class chips only have 64 MiB per TC).
    try:
        vmem_cap = int(pltpu.get_tpu_info().vmem_capacity_bytes)
    except Exception:
        vmem_cap = 64 * 1024 * 1024  # conservative fallback
    vmem_limit = min(32 * 1024 * 1024, max(16 * 1024 * 1024, vmem_cap // 4))
    vmem_budget = min(int(vmem_budget_bytes), vmem_limit // 2)

    # Per (row, class) element: 2 pipelined buffers per input stream at their real
    # itemsizes, plus ~3 live f32 block-shaped temporaries from the elementwise chain.
    bytes_per_elem = 2 * (lit + tit) + 3 * 4

    # Class (lane) tile: keep the full class dim unless even minimal-row blocks would
    # exceed the budget; then tile classes as well (reduction grid axis).
    if 8 * C * bytes_per_elem <= vmem_budget:
        col_tile = C
    else:
        col_cap = max(128, vmem_budget // (8 * bytes_per_elem))
        col_tile = _pick_tile(C, 128, col_cap)

    # Row (sublane) tile: unit depends on input packing (f32 -> 8, bf16 -> 16, int8 -> 32).
    row_unit = max(8, 32 // max(1, min(lit, tit)))
    if B % row_unit != 0:
        row_unit = 8
    row_cap = max(row_unit, vmem_budget // (col_tile * bytes_per_elem))
    row_tile = _pick_tile(B, row_unit, min(row_cap, max_row_tile))

    g = float(gamma)
    g_round = round(g)
    int_gamma = int(g_round) if (abs(g - g_round) < 1e-12 and 0 <= g_round <= 8) else None

    kernel = functools.partial(
        _focal_loss_kernel,
        gamma=g,
        int_gamma=int_gamma,
        binary_targets=bool(binary_targets),
        row_tile=row_tile,
        col_tile=col_tile,
    )

    grid_rows = B // row_tile
    grid = (grid_rows, C // col_tile)

    # EUP transcendentals per element for the chosen path.
    n_transc = 2                                  # exp(-|x|), log1p(exp(-|x|))
    if not binary_targets:
        n_transc += 1                             # exp(-|z|)
    if int_gamma is None:
        n_transc += 1 if binary_targets else 2    # [log1p(e_z)] + exp(gamma*logsig)

    cost = pl.CostEstimate(
        flops=int(12 * B * C),
        transcendentals=int(n_transc * B * C),
        bytes_accessed=int(B * C * (lit + tit) + grid_rows * 8 * 128 * 4),
    )

    partials = pl.pallas_call(
        kernel,
        out_shape=jax.ShapeDtypeStruct((grid_rows, 8, 128), jnp.float32),
        grid=grid,
        in_specs=[
            pl.BlockSpec((row_tile, col_tile), lambda i, j: (i, j)),
            pl.BlockSpec((row_tile, col_tile), lambda i, j: (i, j)),
        ],
        out_specs=pl.BlockSpec((1, 8, 128), lambda i, j: (i, 0, 0)),
        compiler_params=pltpu.CompilerParams(
            # Row axis: independent per-tile output blocks -> parallel (megacore-shardable).
            # Class axis: accumulation into the resident block -> arbitrary (serial).
            dimension_semantics=("parallel", "arbitrary"),
            vmem_limit_bytes=vmem_limit,
        ),
        cost_estimate=cost,
    )(logit, target)

    # Tiny final reduction + single divide-by-batch (matches sum-then-divide rounding).
    return jnp.sum(partials) / jnp.float32(B)


def focal_loss_ref(logit, target, gamma=2.0):
    """Pure-JAX reference mirroring the PyTorch forward exactly."""
    logit = logit.astype(jnp.float32)
    target = target.astype(jnp.float32)
    max_val = jnp.maximum(-logit, 0.0)
    loss = (
        logit
        - logit * target
        + max_val
        + jnp.log(jnp.exp(-max_val) + jnp.exp(-logit - max_val))
    )
    z = -logit * (target * 2.0 - 1.0)
    invprobs = jnp.minimum(z, 0.0) - jnp.log1p(jnp.exp(-jnp.abs(z)))  # logsigmoid(z)
    loss = jnp.exp(invprobs * gamma) * loss
    loss = loss.sum(axis=1)
    return loss.mean()


if __name__ == "__main__":
    key = jax.random.PRNGKey(0)
    k1, k2 = jax.random.split(key)

    B, C = 16, 128  # small (batch, classes) problem; tiles cleanly into (8,128) vregs
    logit = jax.random.normal(k1, (B, C), dtype=jnp.float32) * 2.0
    target = (jax.random.uniform(k2, (B, C)) > 0.5).astype(jnp.float32)

    ref = focal_loss_ref(logit, target, gamma=2.0)

    # Default (general-target) path, integer gamma fast path inside.
    out = jax.block_until_ready(focal_loss(logit, target, gamma=2.0))
    assert jnp.allclose(out, ref, rtol=1e-5, atol=1e-5), (out, ref)

    # Binary-target fast path (shares exp(-|x|)/log1p between BCE and modulation).
    out_b = jax.block_until_ready(focal_loss(logit, target, gamma=2.0, binary_targets=True))
    assert jnp.allclose(out_b, ref, rtol=1e-5, atol=1e-5), (out_b, ref)

    # Soft targets + non-integer gamma exercise the general exp(gamma*logsigmoid) path.
    soft_t = jax.random.uniform(jax.random.PRNGKey(1), (B, C), dtype=jnp.float32)
    ref_s = focal_loss_ref(logit, soft_t, gamma=1.5)
    out_s = jax.block_until_ready(focal_loss(logit, soft_t, gamma=1.5))
    assert jnp.allclose(out_s, ref_s, rtol=1e-5, atol=1e-5), (out_s, ref_s)

    # Narrow-dtype inputs (bf16 logits + bf16 targets): exercises the 16-row sublane
    # unit and halves HBM bytes; compare against the reference on the upcast inputs.
    logit_bf = logit.astype(jnp.bfloat16)
    target_bf = target.astype(jnp.bfloat16)
    ref_bf = focal_loss_ref(logit_bf.astype(jnp.float32), target_bf.astype(jnp.float32),
                            gamma=2.0)
    out_bf = jax.block_until_ready(focal_loss(logit_bf, target_bf, gamma=2.0,
                                              binary_targets=True))
    assert jnp.allclose(out_bf, ref_bf, rtol=1e-5, atol=1e-5), (out_bf, ref_bf)

    print("KERNEL_OK")
</pallas_src>

<mosaic_0001>
module attributes {stable_mosaic.version = 11 : i64} {
  func.func @_focal_loss_kernel(%arg0: i32, %arg1: i32, %arg2: memref<16x128xf32, #tpu.memory_space<vmem>>, %arg3: memref<16x128xf32, #tpu.memory_space<vmem>>, %arg4: memref<1x8x128xf32, #tpu.memory_space<vmem>>) attributes {dimension_semantics = [#tpu.dimension_semantics<parallel>, #tpu.dimension_semantics<arbitrary>], iteration_bounds = array<i64: 1, 1>, scalar_prefetch = 0 : i64, scratch_operands = 0 : i64, tpu.core_type = #tpu.core_type<tc>, window_params = [{transform_indices = @transform_0, window_bounds = array<i64: 16, 128>}, {transform_indices = @transform_1, window_bounds = array<i64: 16, 128>}, {transform_indices = @transform_2, window_bounds = array<i64: 1, 8, 128>}]} {
    %c0 = arith.constant 0 : index
    %c0_0 = arith.constant 0 : index
    %0 = vector.load %arg2[%c0, %c0_0] : memref<16x128xf32, #tpu.memory_space<vmem>>, vector<16x128xf32>
    %c0_1 = arith.constant 0 : index
    %c0_2 = arith.constant 0 : index
    %1 = vector.load %arg3[%c0_1, %c0_2] : memref<16x128xf32, #tpu.memory_space<vmem>>, vector<16x128xf32>
    %2 = math.absf %0 : vector<16x128xf32>
    %cst = arith.constant 0.000000e+00 : f32
    %3 = vector.broadcast %cst : f32 to vector<16x128xf32>
    %4 = arith.subf %3, %2 : vector<16x128xf32>
    %5 = math.exp %4 : vector<16x128xf32>
    %6 = math.log1p %5 : vector<16x128xf32>
    %7 = arith.mulf %0, %1 : vector<16x128xf32>
    %8 = arith.subf %0, %7 : vector<16x128xf32>
    %cst_3 = arith.constant 0.000000e+00 : f32
    %9 = vector.broadcast %cst_3 : f32 to vector<16x128xf32>
    %10 = arith.subf %9, %0 : vector<16x128xf32>
    %cst_4 = arith.constant 0.000000e+00 : f32
    %11 = vector.broadcast %cst_4 : f32 to vector<16x128xf32>
    %12 = arith.maximumf %10, %11 : vector<16x128xf32>
    %13 = arith.addf %8, %12 : vector<16x128xf32>
    %14 = arith.addf %13, %6 : vector<16x128xf32>
    %cst_5 = arith.constant 0.000000e+00 : f32
    %15 = vector.broadcast %cst_5 : f32 to vector<16x128xf32>
    %16 = arith.subf %15, %0 : vector<16x128xf32>
    %cst_6 = arith.constant 2.000000e+00 : f32
    %17 = vector.broadcast %cst_6 : f32 to vector<16x128xf32>
    %18 = arith.mulf %1, %17 : vector<16x128xf32>
    %cst_7 = arith.constant 1.000000e+00 : f32
    %19 = vector.broadcast %cst_7 : f32 to vector<16x128xf32>
    %20 = arith.subf %18, %19 : vector<16x128xf32>
    %21 = arith.mulf %16, %20 : vector<16x128xf32>
    %22 = math.absf %21 : vector<16x128xf32>
    %cst_8 = arith.constant 0.000000e+00 : f32
    %23 = vector.broadcast %cst_8 : f32 to vector<16x128xf32>
    %24 = arith.subf %23, %22 : vector<16x128xf32>
    %25 = math.exp %24 : vector<16x128xf32>
    %cst_9 = arith.constant 0.000000e+00 : f32
    %26 = vector.broadcast %cst_9 : f32 to vector<16x128xf32>
    %27 = arith.cmpf oge, %21, %26 : vector<16x128xf32>
    %cst_10 = arith.constant 1.000000e+00 : f32
    %28 = vector.broadcast %cst_10 : f32 to vector<16x128xf32>
    %29 = arith.select %27, %28, %25 : vector<16x128xi1>, vector<16x128xf32>
    %cst_11 = arith.constant 1.000000e+00 : f32
    %30 = vector.broadcast %cst_11 : f32 to vector<16x128xf32>
    %31 = arith.addf %30, %25 : vector<16x128xf32>
    %32 = arith.divf %29, %31 : vector<16x128xf32>
    %33 = arith.mulf %32, %32 : vector<16x128xf32>
    %34 = arith.mulf %33, %14 : vector<16x128xf32>
    %35 = vector.shape_cast %34 : vector<16x128xf32> to vector<2x8x128xf32>
    %cst_12 = arith.constant dense<0.000000e+00> : vector<8x128xf32>
    %36 = vector.multi_reduction <add>, %35, %cst_12 [0] : vector<2x8x128xf32> to vector<8x128xf32>
    %37 = vector.shape_cast %36 : vector<8x128xf32> to vector<8x1x128xf32>
    %cst_13 = arith.constant dense<0.000000e+00> : vector<8x128xf32>
    %38 = vector.multi_reduction <add>, %37, %cst_13 [1] : vector<8x1x128xf32> to vector<8x128xf32>
    %c0_i32 = arith.constant 0 : i32
    %39 = arith.cmpi eq, %arg1, %c0_i32 : i32
    %40 = arith.extui %39 : i1 to i32
    %c0_i32_14 = arith.constant 0 : i32
    %41 = arith.cmpi ne, %40, %c0_i32_14 : i32
    scf.if %41 {
      %cst_21 = arith.constant 0.000000e+00 : f32
      %48 = vector.broadcast %cst_21 : f32 to vector<1x8x128xf32>
      %c0_22 = arith.constant 0 : index
      %c0_23 = arith.constant 0 : index
      %c0_24 = arith.constant 0 : index
      %49 = vector.load %arg4[%c0_22, %c0_23, %c0_24] : memref<1x8x128xf32, #tpu.memory_space<vmem>>, vector<1x8x128xf32>
      tpu.vector_store %arg4[%c0_22, %c0_23, %c0_24], %48 {strides = array<i32>} : memref<1x8x128xf32, #tpu.memory_space<vmem>>, vector<1x8x128xf32>,
    } else {
    }
    %c0_15 = arith.constant 0 : index
    %c0_16 = arith.constant 0 : index
    %c0_17 = arith.constant 0 : index
    %42 = vector.load %arg4[%c0_15, %c0_16, %c0_17] : memref<1x8x128xf32, #tpu.memory_space<vmem>>, vector<1x8x128xf32>
    %43 = vector.shape_cast %42 : vector<1x8x128xf32> to vector<8x128xf32>
    %44 = arith.addf %43, %38 : vector<8x128xf32>
    %c0_18 = arith.constant 0 : index
    %c0_19 = arith.constant 0 : index
    %c0_20 = arith.constant 0 : index
    %45 = vector.load %arg4[%c0_18, %c0_19, %c0_20] : memref<1x8x128xf32, #tpu.memory_space<vmem>>, vector<1x8x128xf32>
    %46 = vector.shape_cast %45 : vector<1x8x128xf32> to vector<8x128xf32>
    %47 = vector.shape_cast %44 : vector<8x128xf32> to vector<1x8x128xf32>
    tpu.vector_store %arg4[%c0_18, %c0_19, %c0_20], %47 {strides = array<i32>} : memref<1x8x128xf32, #tpu.memory_space<vmem>>, vector<1x8x128xf32>,
    return
  }
  func.func @transform_0(%arg0: i32, %arg1: i32) -> (i32, i32) {
    %c0_i32 = arith.constant 0 : i32
    return %arg0, %arg1 : i32, i32
  }
  func.func @transform_1(%arg0: i32, %arg1: i32) -> (i32, i32) {
    %c0_i32 = arith.constant 0 : i32
    return %arg0, %arg1 : i32, i32
  }
  func.func @transform_2(%arg0: i32, %arg1: i32) -> (i32, i32, i32) {
    %c0_i32 = arith.constant 0 : i32
    %c0_i32_0 = arith.constant 0 : i32
    %c0_i32_1 = arith.constant 0 : i32
    return %arg0, %c0_i32, %c0_i32_0 : i32, i32, i32
  }
}

</mosaic_0001>

<bundles_post_ra>
// kernel: tpu_custom_call.1
= control target key start
LH: loop header
LB: loop body
LE: loop exit
PB: predicated region body
PF: predicated region fallthrough
CT: control target
= control target key end

     0   :  { %7 = vsyncpa [#allocation3], 0  ;;  %s300_s0 = inlined_call_operand.hbm [shape: f32[16,128], index: 0, kind: input, shape index: {}]   ;;  %s301_s1 = inlined_call_operand.hbm [shape: f32[16,128], index: 1, kind: input, shape index: {}]   ;;  %s302_s2 = inlined_call_operand.hbm [shape: f32[1,8,128], index: 2, kind: output, shape index: {}]  }
   0x1   :  { %8 = vsyncpa [#allocation6], 0 }
   0x2   :  { %9 = vsyncpa [#allocation4], 0  ;;  %s232_s9 = smov [#allocation2]   ;;  %s160_s13 = scalar_lea.hbm %s300_s0, 256 }
   0x3   :  { %s15_s10 = sshll.u32 %s232_s9, 4  ;;  %p161_p0 = scmp.ne.s32.totalorder %s300_s0, %s160_s13  ;;  %s16_s10 = int_to_ptr.vmem [resolvable:$true] %s15_s10 }
   0x4   :  { %p164_p1 = scmp.lt.u32.totalorder %s160_s13, %s300_s0 }
   0x6   :  { %p166_p2 = pnand %p164_p1, %p161_p0 }
   0x8   :  { %169 = shalt.err (!%p166_p2)
}
   0x9   :  { %s170_s18 = scalar_lea.vmem %s16_s10, 256  ;;  %p175_p4 = scmp.lt.s32.totalorder %s16_s10, %s16_s10 }
   0xa   :  { %p171_p3 = scmp.ne.s32.totalorder %s16_s10, %s170_s18  ;;  %p176_p5 = scmp.lt.s32.totalorder %s170_s18, %s170_s18 }
   0xc   :  { %p177_p6 = por %p176_p5, %p175_p4 }
   0xe   :  { %p178_p7 = pnand %p177_p6, %p171_p3 }
  0x10   :  { %181 = shalt.err (!%p178_p7)
}
  0x11   :  { %s233_s19 = smov 128   ;;  %s234_s20 = smov 8  }
  0x12   :  { %21 = dma.hbm_to_vmem [thread:$0]  %s300_s0, 256, %s16_s10, [#allocation3], %s233_s19, %s233_s19, %s234_s20  }
  0x13   :  { %s235_s23 = smov [#allocation5]   ;;  %s182_s27 = scalar_lea.hbm %s301_s1, 256 }
  0x14   :  { %s27_s24 = sshll.u32 %s235_s23, 4  ;;  %p183_p8 = scmp.ne.s32.totalorder %s301_s1, %s182_s27  ;;  %s28_s24 = int_to_ptr.vmem [resolvable:$true] %s27_s24 }
  0x15   :  { %p186_p9 = scmp.lt.u32.totalorder %s182_s27, %s301_s1 }
  0x17   :  { %p188_p10 = pnand %p186_p9, %p183_p8 }
  0x19   :  { %191 = shalt.err (!%p188_p10)
}
  0x1a   :  { %s192_s4 = scalar_lea.vmem %s28_s24, 256  ;;  %p197_p12 = scmp.lt.s32.totalorder %s28_s24, %s28_s24 }
  0x1b   :  { %p193_p11 = scmp.ne.s32.totalorder %s28_s24, %s192_s4  ;;  %p198_p13 = scmp.lt.s32.totalorder %s192_s4, %s192_s4 }
  0x1d   :  { %p199_p0 = por %p198_p13, %p197_p12 }
  0x1f   :  { %p200_p1 = pnand %p199_p0, %p193_p11 }
  0x21   :  { %203 = shalt.err (!%p200_p1)
}
  0x22   :  { %33 = dma.hbm_to_vmem [thread:$0]  %s301_s1, 256, %s28_s24, [#allocation6], %s233_s19, %s233_s19, %s234_s20  }
  0x23   :  { %226 = dma.done.wait [#allocation3], 256  }
  0x24   :  { %227 = vsyncadd [#allocation3], 4294967040 }
  0x25   :  { %228 = dma.done.wait [#allocation6], 256  }
  0x26   :  { %229 = vsyncadd [#allocation6], 4294967040  ;;  %v276_v0 = vld [vmem:[#allocation2] sm:$0xff]  ;;  %v278_v1 = vld [vmem:[#allocation2 + $0x8] sm:$0xff]  ;;  %s236_s1 = smov [#allocation7]  }
  0x27   :  { %v42_v2 = vld [vmem:[#allocation5] sm:$0xff]  ;;  %v43_v3 = vld [vmem:[#allocation5 + $0x8] sm:$0xff]  ;;  %v44_v4 = vand.u32 2147483647, %v276_v0  ;;  %v45_v5 = vand.u32 2147483647, %v278_v1 }
  0x28   :  { %v74_v6 = vsub.f32 0.0, %v276_v0  ;;  %v75_v7 = vsub.f32 0.0, %v278_v1  ;;  %v82_v8 = vmul.f32 2.0, %v42_v2  ;;  %v83_v9 = vmul.f32 2.0, %v43_v3  ;;  %s126_s6 = sshll.u32 %s236_s1, 4  ;;  %s127_s6 = int_to_ptr.vmem [resolvable:$true] %s126_s6 }
  0x29   :  { %v46_v10 = vsub.f32 0.0, %v44_v4  ;;  %v47_v11 = vsub.f32 0.0, %v45_v5  ;;  %v70_v33 = vmul.f32 %v42_v2, %v276_v0  ;;  %v71_v36 = vmul.f32 %v43_v3, %v278_v1  ;;  %s204_s7 = scalar_lea.vmem %s127_s6, 128  ;;  %p209_p3 = scmp.lt.s32.totalorder %s127_s6, %s127_s6 }
  0x2a   :  { %v136_v12 = vadd.f32 -1.0, %v82_v8  ;;  %v137_v13 = vadd.f32 -1.0, %v83_v9  ;;  %v76_v42 = vmax.f32 %v74_v6, 0.0  ;;  %v77_v47 = vmax.f32 %v75_v7, 0.0  ;;  %p205_p2 = scmp.ne.s32.totalorder %s127_s6, %s204_s7  ;;  %p210_p4 = scmp.lt.s32.totalorder %s204_s7, %s204_s7 }
  0x2b   :  { %v48_v14 = vmul.f32 1.442695, %v46_v10  ;;  %v50_v15 = vmul.f32 1.442695, %v47_v11  ;;  %v72_v41 = vsub.f32 %v276_v0, %v70_v33  ;;  %v73_v46 = vsub.f32 %v278_v1, %v71_v36 }
  0x2c   :  { %v86_v16 = vmul.f32 %v136_v12, %v74_v6  ;;  %v87_v17 = vmul.f32 %v137_v13, %v75_v7  ;;  %p211_p5 = por %p210_p4, %p209_p3 }
  0x2d   :  { %144 = vpow2.f32 %v48_v14  ;;  %v78_v50 = vadd.f32 %v76_v42, %v72_v41  ;;  %v79_v52 = vadd.f32 %v77_v47, %v73_v46 }
  0x2e   :  { %146 = vpow2.f32 %v50_v15  ;;  %v88_v18 = vand.u32 2147483647, %v86_v16  ;;  %v89_v19 = vand.u32 2147483647, %v87_v17  ;;  %vm96_vm1 = vcmp.ge.f32.partialorder %v86_v16, 0.0  ;;  %p212_p6 = pnand %p211_p5, %p205_p2 }
  0x2f   :  { %vm97_vm3 = vcmp.ge.f32.partialorder %v87_v17, 0.0 }
  0x30   :  { %v90_v20 = vsub.f32 0.0, %v88_v18  ;;  %v91_v21 = vsub.f32 0.0, %v89_v19 }
  0x32   :  { %v92_v22 = vmul.f32 1.442695, %v90_v20  ;;  %v94_v23 = vmul.f32 1.442695, %v91_v21 }
  0x34   :  { %148 = vpow2.f32 %v92_v22 }
  0x35   :  { %150 = vpow2.f32 %v94_v23 }
  0x37   :  { %v145_v24 = vpop.eup %144 }
  0x38   :  { %v147_v25 = vpop.eup %146  ;;  %v52_v26 = vadd.f32 1.0, %v145_v24  ;;  %v55_v28 = vmul.f32 -0.5, %v145_v24  ;;  %v58_v37 = vand.u32 2147483647, %v145_v24 }
  0x39   :  { %v61_v27 = vadd.f32 1.0, %v147_v25  ;;  %v64_v30 = vmul.f32 -0.5, %v147_v25  ;;  %v67_v39 = vand.u32 2147483647, %v147_v25 }
  0x3a   :  { %152 = vlog2.f32 %v52_v26  ;;  %v56_v35 = vadd.f32 1.0, %v55_v28  ;;  %vm59_vm0 = vcmp.lt.f32.partialorder %v58_v37, 0.0004427343 }
  0x3b   :  { %154 = vlog2.f32 %v61_v27  ;;  %v65_v38 = vadd.f32 1.0, %v64_v30  ;;  %vm68_vm2 = vcmp.lt.f32.partialorder %v67_v39, 0.0004427343 }
  0x3c   :  { %v57_v45 = vmul.f32 %v145_v24, %v56_v35 }
  0x3d   :  { %v66_v49 = vmul.f32 %v147_v25, %v65_v38 }
  0x3e   :  { %v149_v29 = vpop.eup %148 }
  0x3f   :  { %v151_v31 = vpop.eup %150  ;;  %v100_v32 = vadd.f32 1.0, %v149_v29  ;;  %v98_v53 = vsel %vm96_vm1, 1.0, %v149_v29 }
  0x40   :  { %v101_v34 = vadd.f32 1.0, %v151_v31  ;;  %v99_v55 = vsel %vm97_vm3, 1.0, %v151_v31 }
  0x41   :  { %156 = vrcp.f32 %v100_v32 }
  0x42   :  { %158 = vrcp.f32 %v101_v34 }
  0x44   :  { %v153_v40 = vpop.eup %152 }
  0x45   :  { %v155_v43 = vpop.eup %154  ;;  %v54_v44 = vmul.f32 0.6931472, %v153_v40 }
  0x46   :  { %v63_v48 = vmul.f32 0.6931472, %v155_v43 }
  0x47   :  { %v60_v51 = vsel %vm59_vm0, %v57_v45, %v54_v44 }
  0x48   :  { %v69_v54 = vsel %vm68_vm2, %v66_v49, %v63_v48  ;;  %v80_v58 = vadd.f32 %v78_v50, %v60_v51 }
  0x49   :  { %v81_v60 = vadd.f32 %v79_v52, %v69_v54 }
  0x4b   :  { %v157_v56 = vpop.eup %156 }
  0x4c   :  { %v159_v57 = vpop.eup %158  ;;  %v103_v59 = vmul.f32 %v157_v56, %v98_v53 }
  0x4d   :  { %v105_v61 = vmul.f32 %v159_v57, %v99_v55 }
  0x4e   :  { %v106_v62 = vmul.f32 %v103_v59, %v103_v59 }
  0x4f   :  { %v107_v63 = vmul.f32 %v105_v61, %v105_v61 }
  0x50   :  { %v108_v0 = vmul.f32 %v106_v62, %v80_v58 }
  0x51   :  { %v109_v1 = vmul.f32 %v107_v63, %v81_v60 }
  0x53   :  { %v110_v2 = vadd.f32 %v109_v1, %v108_v0 }
  0x55   :  { %119 = vst [vmem:[#allocation7] sm:$0xff] %v110_v2 }
  0x56   :  { %215 = shalt.err (!%p212_p6)
}
  0x57   :  { %s216_s10 = scalar_lea.hbm %s302_s2, 128 }
  0x58   :  { %p217_p7 = scmp.ne.s32.totalorder %s302_s2, %s216_s10  ;;  %p220_p8 = scmp.lt.u32.totalorder %s216_s10, %s302_s2 }
  0x5a   :  { %p222_p9 = pnand %p220_p8, %p217_p7 }
  0x5c   :  { %225 = shalt.err (!%p222_p9)
}
  0x5d   :  { %129 = dma.vmem_to_hbm [thread:$0]  %s127_s6, 128, %s302_s2, [#allocation4]  }
  0x5e   :  { %230 = dma.done.wait [#allocation4], 128  }
  0x5f   :  { %231 = vsyncadd [#allocation4], 4294967168 }
  0x60   :  { %133 = vsyncpa [#allocation3], 1 }
  0x61   :  { %134 = vsyncpa [#allocation6], 1 }
  0x62   :  { %135 = vsyncpa [#allocation4], 1 }

</bundles_post_ra>
